<compile_context>
chip_gen: v7x
topology: tpu7x:2x2x1
jax: 0.10.0
libtpu: 0.0.40
codegen_flags: <defaults>
</compile_context>

<pallas_src>
import math
import functools

import jax
import jax.numpy as jnp
from jax.experimental import pallas as pl
from jax.experimental.pallas import tpu as pltpu


def _round_up(x, m):
    return ((x + m - 1) // m) * m


def _pick_tile(size_padded, align, cap):
    """Largest t with t % align == 0, size_padded % t == 0 and t <= cap.

    Padding-aware: the chosen tile always divides the (already lane/sublane
    padded) extent, so no extra zero padding beyond the alignment minimum.
    """
    best = align
    t = align
    limit = min(cap, size_padded)
    while t <= limit:
        if size_padded % t == 0:
            best = t
        t += align
    return best


def _vmem_limit_bytes():
    """Per-generation VMEM budget: ~3/4 of physical (48 MiB v7x, 96 MiB v5e/v6e)."""
    cap = 64 * 1024 * 1024  # v7x-safe fallback if the query is unavailable
    try:
        info = pltpu.get_tpu_info()
        cap = int(getattr(info, "vmem_capacity_bytes", cap))
    except Exception:
        pass
    return int(min(96 * 1024 * 1024, (cap * 3) // 4))


# ----------------------------- kernels ---------------------------------------

def _linear_bias_relu_kernel(x_ref, w_ref, b_ref, o_ref, acc_ref):
    """Multi K-step path: f32 VMEM accumulator, bias + ReLU fused into finalize."""
    k = pl.program_id(2)

    @pl.when(k == 0)
    def _():
        acc_ref[...] = jnp.zeros_like(acc_ref)

    acc_ref[...] += jnp.dot(x_ref[...], w_ref[...],
                            preferred_element_type=jnp.float32)

    @pl.when(k == pl.num_programs(2) - 1)
    def _():
        acc = acc_ref[...] + b_ref[...]
        o_ref[...] = jnp.maximum(acc, 0.0).astype(o_ref.dtype)


def _linear_bias_relu_kernel_1k(x_ref, w_ref, b_ref, o_ref):
    """Single K-step path: no scratch accumulator, no init/finalize branches."""
    acc = jnp.dot(x_ref[...], w_ref[...], preferred_element_type=jnp.float32)
    acc = acc + b_ref[...]
    o_ref[...] = jnp.maximum(acc, 0.0).astype(o_ref.dtype)


# ----------------------------- wrapper ----------------------------------------

def prepare_params(weight, bias, compute_dtype=jnp.bfloat16):
    """One-time prep of nn.Linear params for the kernel.

    PyTorch weight (out_dim, in_dim) -> transposed (Kp, Np), cast to the MXU
    compute dtype and zero-padded to lane multiples; bias -> f32 (1, Np).
    Hoisting transpose/cast/padding here keeps them out of the per-forward path.
    """
    w = jnp.asarray(weight)
    b = jnp.asarray(bias)
    N, K = w.shape
    Kp, Np = _round_up(K, 128), _round_up(N, 128)
    w_t = w.T.astype(compute_dtype)
    if (Kp, Np) != (K, N):
        w_t = jnp.pad(w_t, ((0, Kp - K), (0, Np - N)))
    b_row = b if Np == N else jnp.pad(b, (0, Np - N))
    b_row = b_row.astype(jnp.float32).reshape(1, Np)
    return w_t, b_row, N


@functools.partial(
    jax.jit,
    static_argnames=("out_dim", "tile_m", "tile_n", "tile_k", "compute_dtype"))
def linear_block_relu(x, w_t, b_row, *, out_dim,
                      tile_m=512, tile_n=512, tile_k=1024,
                      compute_dtype=jnp.bfloat16):
    """out = relu(x @ W^T + b); W/b pre-packed by prepare_params.

    NOTE: the MXU is fed `compute_dtype` (bf16 by default) with f32 accumulation;
    results match an f32 PyTorch Linear only to bf16 precision, not bit-for-bit.
    """
    M, K = x.shape
    Kp, Np = w_t.shape
    N = out_dim
    assert K <= Kp and N <= Np and b_row.shape == (1, Np)

    c_dtype = jnp.dtype(compute_dtype)
    align_m = 16 if c_dtype.itemsize < 4 else 8   # bf16 sublane packing
    Mp = _round_up(M, align_m)

    # Padding-aware, VMEM-friendly tile selection.
    tm = _pick_tile(Mp, align_m, tile_m)
    tn = _pick_tile(Np, 128, tile_n)
    tk = _pick_tile(Kp, 128, tile_k)

    # v7x megacore: keep >=2 blocks on at least one 'parallel' axis when the
    # shape allows it, so the second TensorCore isn't idle.
    if Mp // tm == 1 and Np // tn == 1:
        if Np >= 256:
            tn = _pick_tile(Np, 128, max(128, tn // 2))
        elif Mp >= 2 * align_m:
            tm = _pick_tile(Mp, align_m, max(align_m, tm // 2))

    grid_m, grid_n, grid_k = Mp // tm, Np // tn, Kp // tk

    # Only x is touched per call: cast to the MXU compute dtype, pad if needed.
    xc = x.astype(compute_dtype)
    if (Mp, Kp) != (M, K):
        xc = jnp.pad(xc, ((0, Mp - M), (0, Kp - K)))

    c_size = c_dtype.itemsize
    o_size = jnp.dtype(x.dtype).itemsize
    cost = pl.CostEstimate(
        flops=2 * Mp * Np * Kp,
        transcendentals=0,
        bytes_accessed=(grid_n * Mp * Kp * c_size      # x re-read per N block
                        + grid_m * Kp * Np * c_size    # w re-read per M block
                        + grid_m * Np * 4              # bias per M block
                        + Mp * Np * o_size),           # output written once
    )
    vmem_limit = _vmem_limit_bytes()

    if grid_k == 1:
        # Whole K fits one tile: fully fused single-step epilogue, no scratch.
        out_p = pl.pallas_call(
            _linear_bias_relu_kernel_1k,
            out_shape=jax.ShapeDtypeStruct((Mp, Np), x.dtype),
            grid_spec=pltpu.PrefetchScalarGridSpec(
                num_scalar_prefetch=0,
                grid=(grid_m, grid_n),
                in_specs=[
                    pl.BlockSpec((tm, Kp), lambda i, j: (i, 0)),
                    pl.BlockSpec((Kp, tn), lambda i, j: (0, j)),
                    pl.BlockSpec((1, tn), lambda i, j: (0, j)),
                ],
                out_specs=pl.BlockSpec((tm, tn), lambda i, j: (i, j)),
            ),
            compiler_params=pltpu.CompilerParams(
                dimension_semantics=("parallel", "parallel"),
                vmem_limit_bytes=vmem_limit,
            ),
            cost_estimate=cost,
        )(xc, w_t, b_row)
    else:
        out_p = pl.pallas_call(
            _linear_bias_relu_kernel,
            out_shape=jax.ShapeDtypeStruct((Mp, Np), x.dtype),
            grid_spec=pltpu.PrefetchScalarGridSpec(
                num_scalar_prefetch=0,
                grid=(grid_m, grid_n, grid_k),
                in_specs=[
                    pl.BlockSpec((tm, tk), lambda i, j, k: (i, k)),
                    pl.BlockSpec((tk, tn), lambda i, j, k: (k, j)),
                    pl.BlockSpec((1, tn), lambda i, j, k: (0, j)),
                ],
                out_specs=pl.BlockSpec((tm, tn), lambda i, j, k: (i, j)),
                scratch_shapes=[pltpu.VMEM((tm, tn), jnp.float32)],
            ),
            compiler_params=pltpu.CompilerParams(
                dimension_semantics=("parallel", "parallel", "arbitrary"),
                vmem_limit_bytes=vmem_limit,
            ),
            cost_estimate=cost,
        )(xc, w_t, b_row)

    if Mp == M and Np == N:
        return out_p
    return out_p[:M, :N]


# ----------------------------- test harness -----------------------------------

def init_linear_params(key, input_dim, output_dim, dtype=jnp.float32):
    """Deterministic init mirroring nn.Linear default (kaiming-uniform style)."""
    kw, kb = jax.random.split(key)
    bound = 1.0 / math.sqrt(input_dim)
    weight = jax.random.uniform(kw, (output_dim, input_dim), dtype,
                                minval=-bound, maxval=bound)
    bias = jax.random.uniform(kb, (output_dim,), dtype,
                              minval=-bound, maxval=bound)
    return weight, bias


def _ref_forward(x, weight, bias):
    return jnp.maximum(
        jnp.dot(x, weight.T, precision=jax.lax.Precision.HIGHEST) + bias, 0.0)


if __name__ == "__main__":
    key = jax.random.PRNGKey(0)
    k_x1, k_p1, k_x2, k_p2 = jax.random.split(key, 4)

    # Case 1: LinearBlock(input_dim=32, output_dim=64), batch=8.
    x1 = jax.random.normal(k_x1, (8, 32), jnp.float32)
    w1, b1 = init_linear_params(k_p1, 32, 64)
    w1_t, b1_row, n1 = prepare_params(w1, b1)
    out1 = jax.block_until_ready(linear_block_relu(x1, w1_t, b1_row, out_dim=n1))
    ref1 = _ref_forward(x1, w1, b1)
    assert out1.shape == (8, 64)
    # bf16 MXU inputs + f32 accumulation: compare against the f32 reference with
    # a bf16-sized error budget.
    assert jnp.allclose(out1, ref1, atol=3e-2, rtol=3e-2), \
        float(jnp.max(jnp.abs(out1 - ref1)))

    # Case 2: non-tile-aligned shapes (300x200 -> 320): exercises padding-aware
    # tiles, the megacore N-split and the single-K-step kernel.
    x2 = jax.random.normal(k_x2, (300, 200), jnp.float32)
    w2, b2 = init_linear_params(k_p2, 200, 320)
    w2_t, b2_row, n2 = prepare_params(w2, b2)
    out2 = jax.block_until_ready(linear_block_relu(x2, w2_t, b2_row, out_dim=n2))
    ref2 = _ref_forward(x2, w2, b2)
    assert out2.shape == (300, 320)
    assert jnp.allclose(out2, ref2, atol=3e-2, rtol=3e-2), \
        float(jnp.max(jnp.abs(out2 - ref2)))

    # Case 3: same inputs with tile_k=128 to exercise the multi-K accumulator
    # kernel (K-last reduction grid + pl.when init/finalize).
    out3 = jax.block_until_ready(
        linear_block_relu(x2, w2_t, b2_row, out_dim=n2, tile_k=128))
    assert jnp.allclose(out3, ref2, atol=3e-2, rtol=3e-2), \
        float(jnp.max(jnp.abs(out3 - ref2)))

    print("KERNEL_OK")
</pallas_src>

<mosaic_0001>
module attributes {stable_mosaic.version = 11 : i64} {
  func.func @_linear_bias_relu_kernel_1k(%arg0: i32, %arg1: i32, %arg2: memref<16x128xbf16, #tpu.memory_space<vmem>>, %arg3: memref<128x128xbf16, #tpu.memory_space<vmem>>, %arg4: memref<1x128xf32, #tpu.memory_space<vmem>>, %arg5: memref<16x128xf32, #tpu.memory_space<vmem>>) attributes {dimension_semantics = [#tpu.dimension_semantics<parallel>, #tpu.dimension_semantics<parallel>], iteration_bounds = array<i64: 1, 1>, scalar_prefetch = 0 : i64, scratch_operands = 0 : i64, tpu.core_type = #tpu.core_type<tc>, window_params = [{transform_indices = @transform_0, window_bounds = array<i64: 16, 128>}, {transform_indices = @transform_1, window_bounds = array<i64: 128, 128>}, {transform_indices = @transform_2, window_bounds = array<i64: 1, 128>}, {transform_indices = @transform_3, window_bounds = array<i64: 16, 128>}]} {
    %c0 = arith.constant 0 : index
    %c0_0 = arith.constant 0 : index
    %0 = vector.load %arg2[%c0, %c0_0] : memref<16x128xbf16, #tpu.memory_space<vmem>>, vector<16x128xbf16>
    %c0_1 = arith.constant 0 : index
    %c0_2 = arith.constant 0 : index
    %1 = vector.load %arg3[%c0_1, %c0_2] : memref<128x128xbf16, #tpu.memory_space<vmem>>, vector<128x128xbf16>
    %cst = arith.constant dense<0.000000e+00> : vector<16x128xf32>
    %2 = tpu.matmul %0, %1, %cst {dimension_numbers = #tpu.dot_dimension_numbers<[1], [0], [0], [1], [0, 0, 1, 1], [], []>} : vector<16x128xbf16>, vector<128x128xbf16>, vector<16x128xf32> -> vector<16x128xf32>
    %c0_3 = arith.constant 0 : index
    %c0_4 = arith.constant 0 : index
    %3 = vector.load %arg4[%c0_3, %c0_4] : memref<1x128xf32, #tpu.memory_space<vmem>>, vector<1x128xf32>
    %4 = vector.broadcast %3 : vector<1x128xf32> to vector<16x128xf32>
    %5 = arith.addf %2, %4 : vector<16x128xf32>
    %cst_5 = arith.constant 0.000000e+00 : f32
    %6 = vector.broadcast %cst_5 : f32 to vector<16x128xf32>
    %7 = arith.maximumf %5, %6 : vector<16x128xf32>
    %c0_6 = arith.constant 0 : index
    %c0_7 = arith.constant 0 : index
    %8 = vector.load %arg5[%c0_6, %c0_7] : memref<16x128xf32, #tpu.memory_space<vmem>>, vector<16x128xf32>
    tpu.vector_store %arg5[%c0_6, %c0_7], %7 {strides = array<i32>} : memref<16x128xf32, #tpu.memory_space<vmem>>, vector<16x128xf32>,
    return
  }
  func.func @transform_0(%arg0: i32, %arg1: i32) -> (i32, i32) {
    %c0_i32 = arith.constant 0 : i32
    %c0_i32_0 = arith.constant 0 : i32
    return %arg0, %c0_i32 : i32, i32
  }
  func.func @transform_1(%arg0: i32, %arg1: i32) -> (i32, i32) {
    %c0_i32 = arith.constant 0 : i32
    %c0_i32_0 = arith.constant 0 : i32
    return %c0_i32, %arg1 : i32, i32
  }
  func.func @transform_2(%arg0: i32, %arg1: i32) -> (i32, i32) {
    %c0_i32 = arith.constant 0 : i32
    %c0_i32_0 = arith.constant 0 : i32
    return %c0_i32, %arg1 : i32, i32
  }
  func.func @transform_3(%arg0: i32, %arg1: i32) -> (i32, i32) {
    %c0_i32 = arith.constant 0 : i32
    return %arg0, %arg1 : i32, i32
  }
}

</mosaic_0001>

<bundles_post_ra>
// kernel: linear_block_relu.1
= control target key start
LH: loop header
LB: loop body
LE: loop exit
PB: predicated region body
PF: predicated region fallthrough
CT: control target
= control target key end

     0   :  { %8 = vsyncpa [#allocation3], 0  ;;  %s235_s12 = smov [#allocation2]   ;;  %s284_s0 = inlined_call_operand.vmem [shape: bf16[16,128], index: 0, kind: input, shape index: {}]   ;;  %s285_s1 = inlined_call_operand.hbm [shape: bf16[128,128], index: 1, kind: input, shape index: {}]   ;;  %s286_s2 = inlined_call_operand.vmem [shape: f32[1,128], index: 2, kind: input, shape index: {}]   ;;  %s287_s3 = inlined_call_operand.vmem [shape: f32[16,128], index: 3, kind: output, shape index: {}]  }
   0x1   :  { %s16_s13 = sshll.u32 %s235_s12, 4  ;;  %s211_s16 = scalar_lea.hbm %s285_s1, 1024  ;;  %s17_s13 = int_to_ptr.vmem [resolvable:$true] %s16_s13 }
   0x2   :  { %p212_p0 = scmp.ne.s32.totalorder %s285_s1, %s211_s16  ;;  %p215_p1 = scmp.lt.u32.totalorder %s211_s16, %s285_s1 }
   0x4   :  { %p217_p2 = pnand %p215_p1, %p212_p0 }
   0x6   :  { %220 = shalt.err (!%p217_p2)
}
   0x7   :  { %s221_s21 = scalar_lea.vmem %s17_s13, 1024  ;;  %p226_p4 = scmp.lt.s32.totalorder %s17_s13, %s17_s13 }
   0x8   :  { %p222_p3 = scmp.ne.s32.totalorder %s17_s13, %s221_s21  ;;  %p227_p5 = scmp.lt.s32.totalorder %s221_s21, %s221_s21 }
   0xa   :  { %p228_p6 = por %p227_p5, %p226_p4 }
   0xc   :  { %p229_p7 = pnand %p228_p6, %p222_p3 }
   0xe   :  { %232 = shalt.err (!%p229_p7)
}
   0xf   :  { %s236_s22 = smov 64   ;;  %s237_s23 = smov 4  }
  0x10   :  { %22 = dma.hbm_to_vmem [thread:$0]  %s285_s1, 1024, %s17_s13, [#allocation3], %s236_s22, %s236_s22, %s237_s23  }
  0x11   :  { %233 = dma.done.wait [#allocation3], 1024  }
  0x12   :  { %234 = vsyncadd [#allocation3], 4294966272  ;;  %v238_v0 = vmov 0.0   ;;  %vm239_vm0 = vmmov 0   ;;  %v202_v1 = vld [vmem:[#allocation2] sm:$0xff]   ;;  %v203_v2 = vld [vmem:[#allocation2 + $0x8] sm:$0xff]  }
  0x13   :  { %177 = vmatprep.subr.bf16.mxu0 %v238_v0  ;;  %193 = vmatprep.mubr.msk.bf16.mxu0 %vm239_vm0, %v238_v0  ;;  %v204_v3 = vld [vmem:[#allocation2 + $0x10] sm:$0xff]   ;;  %v205_v4 = vld [vmem:[#allocation2 + $0x18] sm:$0xff]   ;;  %v206_v5 = vld [vmem:[#allocation2 + $0x20] sm:$0xff]  }
  0x14   :  { %178 = vmatpush3.bf16.msra.mxu0 %v202_v1  ;;  %v207_v6 = vld [vmem:[#allocation2 + $0x28] sm:$0xff]   ;;  %v208_v7 = vld [vmem:[#allocation2 + $0x30] sm:$0xff]   ;;  %v209_v8 = vld [vmem:[#allocation2 + $0x38] sm:$0xff]  }
  0x15   :  { %179 = vmatprep.subr.bf16.mxu0 %v238_v0  ;;  %v210_v9 = vld [vmem:[%s284_s0] sm:$0xff]  }
  0x16   :  { %v158_v10 = vld [vmem:[%s286_s2] ss:$0 sm:$0xff] }
  0x18   :  { %180 = vmatpush3.bf16.msra.mxu0 %v203_v2 }
  0x19   :  { %181 = vmatprep.subr.bf16.mxu0 %v238_v0 }
  0x1c   :  { %182 = vmatpush3.bf16.msra.mxu0 %v204_v3 }
  0x1d   :  { %183 = vmatprep.subr.bf16.mxu0 %v238_v0 }
  0x20   :  { %184 = vmatpush3.bf16.msra.mxu0 %v205_v4 }
  0x21   :  { %185 = vmatprep.subr.bf16.mxu0 %v238_v0 }
  0x24   :  { %186 = vmatpush3.bf16.msra.mxu0 %v206_v5 }
  0x25   :  { %187 = vmatprep.subr.bf16.mxu0 %v238_v0 }
  0x28   :  { %188 = vmatpush3.bf16.msra.mxu0 %v207_v6 }
  0x29   :  { %189 = vmatprep.subr.bf16.mxu0 %v238_v0 }
  0x2c   :  { %190 = vmatpush3.bf16.msra.mxu0 %v208_v7 }
  0x2d   :  { %191 = vmatprep.subr.bf16.mxu0 %v238_v0 }
  0x30   :  { %192 = vmatpush3.bf16.msra.mxu0 %v209_v8 }
  0x33   :  { %194 = vmatmul.mubr.bf16.vlgmr.msra.gmra.mrb[0].mxu0 %v210_v9 }
 0x106   :  { %v142_v11 = vpop.f32.mrb[0].mxu0 }
 0x107   :  { %v143_v12 = vadd.f32 %v158_v10, %v142_v11  ;;  %v195_v13 = vpop.f32.mrb[1].mxu0 }
 0x108   :  { %v145_v14 = vpop.f32.mrb[2].mxu0 }
 0x109   :  { %v149_v15 = vmax.f32 %v143_v12, 0.0  ;;  %v146_v16 = vadd.f32 %v158_v10, %v145_v14  ;;  %v196_v17 = vpop.f32.mrb[3].mxu0 }
 0x10b   :  { %151 = vst [vmem:[%s287_s3] sm:$0xff] %v149_v15  ;;  %v150_v18 = vmax.f32 %v146_v16, 0.0 }
 0x10d   :  { %152 = vst [vmem:[%s287_s3 + $0x8] sm:$0xff] %v150_v18 }
 0x10e   :  { %157 = vsyncpa [#allocation3], 1 }

</bundles_post_ra>
